<compile_context>
chip_gen: v7x
topology: tpu7x:2x2x1
jax: 0.10.0
libtpu: 0.0.40
codegen_flags: <defaults>
</compile_context>

<pallas_src>
import jax
import jax.numpy as jnp
from jax import lax
from jax.experimental import pallas as pl
from jax.experimental.pallas import tpu as pltpu


VMEM_LIMIT = 32 * 1024 * 1024      # scoped-VMEM limit; safe on v5e/v6e/v7x
TILE_BUDGET = 8 * 1024 * 1024      # per-kernel double-buffered input budget
LANE = 128
MAX_TILE_P = 2048                  # lane-tile target upper bound
MIN_STEPS_PER_SPLIT = 4            # keep the pipeline busy per TensorCore
QP_REFINE_STEPS = 32               # PGD refinement after the direct solve


def _cdiv(a, b):
    return -(-a // b)


def _round_up(x, m):
    return _cdiv(x, m) * m


def detect_num_splits():
    """2-way parallel split only on 2-TensorCore chips (v7x); 1 elsewhere."""
    try:
        kind = (jax.devices()[0].device_kind or "").lower()
    except Exception:
        return 1
    return 2 if ("v7" in kind or "7x" in kind) else 1


def pick_tile_p(p_total, bytes_per_col, n_splits,
                budget_bytes=TILE_BUDGET, max_tile=MAX_TILE_P,
                min_steps=MIN_STEPS_PER_SPLIT):
    """Lane tile: multiple of 128, <= max_tile, double-buffered block under
    budget, and small enough that each split still gets >= min_steps steps."""
    fit = max(LANE, (budget_bytes // (2 * bytes_per_col)) // LANE * LANE)
    per_split = _cdiv(p_total, n_splits)
    steps_tile = max(LANE, _round_up(_cdiv(per_split, min_steps), LANE))
    return max(LANE, min(max_tile, fit, steps_tile))


# ----------------------------------------------------------------------------
# Kernel 1: synthetic "net" forward (stands in for self.net in GEM.forward).
# TODO(synk): the real GEM wraps an arbitrary TTS model (self.net), a criterion,
# an optimizer and a teacher-forcing schedule; those have no concrete compute
# here, so a small 2-layer MLP stands in as the wrapped network.
# ----------------------------------------------------------------------------
def mlp_fwd_kernel(x_ref, w1_ref, b1_ref, w2_ref, b2_ref, o_ref):
    # PyTorch Linear: y = x @ W.T + b.  Contract last axes directly (no .T).
    dn = (((1,), (1,)), ((), ()))
    h = jnp.tanh(
        lax.dot_general(x_ref[...], w1_ref[...], dn,
                        preferred_element_type=jnp.float32)
        + b1_ref[...]
    )
    o_ref[...] = (
        lax.dot_general(h, w2_ref[...], dn, preferred_element_type=jnp.float32)
        + b2_ref[...]
    ).astype(o_ref.dtype)


def make_mlp_forward(w1, b1, w2, b2):
    """Pads the static weights once and returns a jitted forward(x)."""
    dh, din = w1.shape
    dout = w2.shape[0]
    dout_pad = _round_up(dout, LANE)
    w2_p = jnp.pad(w2, ((0, dout_pad - dout), (0, 0)))
    b2_p = jnp.pad(b2, ((0, 0), (0, dout_pad - dout)))

    @jax.jit
    def fwd(x):
        B = x.shape[0]
        b_pad = _round_up(B, 8)
        x_p = jnp.pad(x, ((0, b_pad - B), (0, 0)))
        out = pl.pallas_call(
            mlp_fwd_kernel,
            out_shape=jax.ShapeDtypeStruct((b_pad, dout_pad), jnp.float32),
            grid=(1,),
            in_specs=[
                pl.BlockSpec((b_pad, din), lambda i: (0, 0)),
                pl.BlockSpec((dh, din), lambda i: (0, 0)),
                pl.BlockSpec((1, dh), lambda i: (0, 0)),
                pl.BlockSpec((dout_pad, dh), lambda i: (0, 0)),
                pl.BlockSpec((1, dout_pad), lambda i: (0, 0)),
            ],
            out_specs=pl.BlockSpec((b_pad, dout_pad), lambda i: (0, 0)),
            compiler_params=pltpu.CompilerParams(vmem_limit_bytes=VMEM_LIMIT),
        )(x_p, w1, b1, w2_p, b2_p)
        return out[:B, :dout]

    return fwd


# ----------------------------------------------------------------------------
# Kernel 2: one streaming pass over the bf16 gradient memory M (T real rows,
# no padding rows) plus the fp32 current gradient g, producing
#   Pm = M @ M^T          (T, T)  fp32   (project2cone2's P)
#   dq = g @ M^T          (1, T)  fp32   (dotp violation test; q = -dq)
# Accumulates directly into the VMEM-resident output blocks (block index is
# constant across the reduction axis).  A leading "parallel" split uses both
# v7x TensorCores; on single-TC chips the split is 1 (no overhead).
# ----------------------------------------------------------------------------
def gram_kernel(m_ref, g_ref, pm_ref, dq_ref):
    k = pl.program_id(1)

    @pl.when(k == 0)
    def _():
        pm_ref[...] = jnp.zeros_like(pm_ref)
        dq_ref[...] = jnp.zeros_like(dq_ref)

    m = m_ref[...]                                   # (T, tile_p) bf16
    dn = (((1,), (1,)), ((), ()))
    # bf16 x bf16 on the MXU, fp32 accumulate, no materialized transpose.
    pm_ref[...] += lax.dot_general(m, m, dn, preferred_element_type=jnp.float32)
    # Reference-precision dot products against the fp32 current gradient.
    # (The fp32 copy of m here is tiny: T rows of one lane tile.)
    dq_ref[...] += lax.dot_general(
        g_ref[...], m.astype(jnp.float32), dn,
        preferred_element_type=jnp.float32)


def gram(mem_bf16, g_f32, tile_p, n_splits):
    T, P = mem_bf16.shape
    k_steps = P // (n_splits * tile_p)
    assert n_splits * tile_p * k_steps == P
    pm, dq = pl.pallas_call(
        gram_kernel,
        out_shape=(
            jax.ShapeDtypeStruct((n_splits, T, T), jnp.float32),
            jax.ShapeDtypeStruct((n_splits, 1, T), jnp.float32),
        ),
        grid=(n_splits, k_steps),
        in_specs=[
            pl.BlockSpec((T, tile_p), lambda s, k: (0, s * k_steps + k)),
            pl.BlockSpec((1, tile_p), lambda s, k: (0, s * k_steps + k)),
        ],
        out_specs=(
            pl.BlockSpec((None, T, T), lambda s, k: (s, 0, 0)),
            pl.BlockSpec((None, 1, T), lambda s, k: (s, 0, 0)),
        ),
        compiler_params=pltpu.CompilerParams(
            dimension_semantics=("parallel", "arbitrary"),
            vmem_limit_bytes=VMEM_LIMIT,
        ),
    )(mem_bf16, g_f32)
    return pm, dq


# ----------------------------------------------------------------------------
# Kernel 3: cone projection x = v @ M + g, tiled over the parameter axis.
# The bf16 memory tile goes straight to the MXU (fp32 accumulation); only the
# add and the output are fp32.  Only executed when a violation occurred.
# ----------------------------------------------------------------------------
def project_kernel(v_ref, m_ref, g_ref, x_ref):
    x_ref[...] = (
        jnp.dot(v_ref[...], m_ref[...], preferred_element_type=jnp.float32)
        + g_ref[...]
    ).astype(x_ref.dtype)


def project(v_row_bf16, mem_bf16, g_f32, tile_p):
    T, P = mem_bf16.shape
    assert P % tile_p == 0
    return pl.pallas_call(
        project_kernel,
        out_shape=jax.ShapeDtypeStruct((1, P), jnp.float32),
        grid=(P // tile_p,),
        in_specs=[
            pl.BlockSpec((1, T), lambda k: (0, 0)),
            pl.BlockSpec((T, tile_p), lambda k: (0, k)),
            pl.BlockSpec((1, tile_p), lambda k: (0, k)),
        ],
        out_specs=pl.BlockSpec((1, tile_p), lambda k: (0, k)),
        compiler_params=pltpu.CompilerParams(
            dimension_semantics=("parallel",),
            vmem_limit_bytes=VMEM_LIMIT,
        ),
    )(v_row_bf16, mem_bf16, g_f32)


# ----------------------------------------------------------------------------
# Glue: reference MLP for producing per-task gradients, flatten/unflatten.
# ----------------------------------------------------------------------------
def mlp_ref(params, x):
    w1, b1, w2, b2 = params
    h = jnp.tanh(x @ w1.T + b1)
    return h @ w2.T + b2


def loss_fn(params, x, y):
    return jnp.mean((mlp_ref(params, x) - y) ** 2)


if __name__ == "__main__":
    key = jax.random.PRNGKey(0)
    B, DIN, DH, DOUT = 4, 32, 64, 16
    N_TASKS = 3
    CUR_TASK = N_TASKS - 1          # number of memory tasks (rows of M)
    MARGIN, EPS = 0.5, 1e-3

    ks = jax.random.split(key, 8)
    w1 = 0.1 * jax.random.normal(ks[0], (DH, DIN), jnp.float32)
    b1 = jnp.zeros((1, DH), jnp.float32)
    w2 = 0.1 * jax.random.normal(ks[1], (DOUT, DH), jnp.float32)
    b2 = jnp.zeros((1, DOUT), jnp.float32)
    params = (w1, b1, w2, b2)

    # ---- GEM.forward: delegate to the (synthetic) net, on TPU via Pallas ----
    mlp_forward = make_mlp_forward(w1, b1, w2, b2)
    x_in = jax.random.normal(ks[2], (B, DIN), jnp.float32)
    pred = mlp_forward(x_in)
    jax.block_until_ready(pred)

    # ---- grad_dims / grads buffer (as in GEM.__init__) ----------------------
    leaves = jax.tree_util.tree_leaves(params)
    grad_dims = [int(p.size) for p in leaves]
    P_TOTAL = sum(grad_dims)

    NUM_SPLITS = detect_num_splits()
    # bytes per parameter column across the streamed arrays of the heavier
    # (project) pass: CUR_TASK bf16 memory rows + fp32 gradient + fp32 output
    BYTES_PER_COL = CUR_TASK * 2 + 8
    TILE_P = pick_tile_p(P_TOTAL, BYTES_PER_COL, NUM_SPLITS)
    P_PAD = _round_up(P_TOTAL, NUM_SPLITS * TILE_P)

    def flatten_pad(grad_tree):
        flat = jnp.concatenate(
            [g.reshape(-1) for g in jax.tree_util.tree_leaves(grad_tree)]
        )
        return jnp.pad(flat, (0, P_PAD - P_TOTAL))

    # current-task gradient, kept fp32 (violation test + projection add)
    y_cur = jax.random.normal(ks[3], (B, DOUT), jnp.float32)
    g_cur_flat = flatten_pad(jax.grad(loss_fn)(params, x_in, y_cur))
    g_cur_f32 = g_cur_flat.reshape(1, P_PAD)

    # gradient memory: only the CUR_TASK real rows, stored bf16 (half the HBM
    # bytes on the streaming passes); targets flipped so the violation fires.
    mem_rows = []
    for t in range(CUR_TASK):
        x_t = x_in + 0.01 * jax.random.normal(ks[4 + t], (B, DIN), jnp.float32)
        g_t = flatten_pad(jax.grad(loss_fn)(params, x_t, -y_cur))
        mem_rows.append(g_t.astype(jnp.bfloat16))
    mem_bf16 = jnp.stack(mem_rows, axis=0)           # (CUR_TASK, P_PAD) bf16

    # ---- GEM.observe hot path: fully on-device, single jit ------------------
    @jax.jit
    def observe_core(mem, g_f32):
        pm_parts, dq_parts = gram(mem, g_f32, TILE_P, NUM_SPLITS)
        Pm_raw = pm_parts.sum(axis=0)                 # (t, t)  fp32
        dotp = dq_parts.sum(axis=0)[0]                # (t,)    g · m_i
        violated = jnp.any(dotp < 0)

        def project_branch():
            # project2cone2: P = M M^T (symmetrized + eps*I), q = -(M g)
            Pm = 0.5 * (Pm_raw + Pm_raw.T) + EPS * jnp.eye(CUR_TASK,
                                                           dtype=jnp.float32)
            q = -dotp
            # TODO(synk): quadprog.solve_qp (exact float64 dual QP) has no
            # Pallas/JAX equivalent; approximate the tiny (t x t) QP with a
            # direct SPD solve + clamp plus a few projected-gradient steps.
            v0 = jnp.maximum(jnp.linalg.solve(Pm, q), MARGIN)
            lr = 1.0 / (jnp.trace(Pm) + 1e-6)
            v = lax.fori_loop(
                0, QP_REFINE_STEPS,
                lambda _, vv: jnp.maximum(vv - lr * (Pm @ vv - q), MARGIN),
                v0)
            v_row = v.reshape(1, CUR_TASK).astype(jnp.bfloat16)
            return project(v_row, mem, g_f32, TILE_P)

        # skip the second HBM sweep entirely when nothing is violated
        x_new = lax.cond(violated, project_branch, lambda: g_f32)
        return x_new, violated, dotp

    x_new, violated, dotp = observe_core(mem_bf16, g_cur_f32)
    jax.block_until_ready((x_new, violated, dotp))

    # overwrite_grad: unflatten the (possibly projected) gradient back to
    # per-parameter shapes (pure bookkeeping, stays in JAX).
    # TODO(synk): gradient clipping + optimizer.step of the wrapped net are
    # framework glue with no kernel compute; omitted.
    flat = x_new[0][:P_TOTAL]
    new_grads, off = [], 0
    for p in leaves:
        new_grads.append(flat[off: off + p.size].reshape(p.shape))
        off += int(p.size)
    jax.block_until_ready(new_grads)

    print("KERNEL_OK")
</pallas_src>

<mosaic_0001>
module attributes {stable_mosaic.version = 11 : i64} {
  func.func @mlp_fwd_kernel(%arg0: i32, %arg1: memref<8x32xf32, #tpu.memory_space<vmem>>, %arg2: memref<64x32xf32, #tpu.memory_space<vmem>>, %arg3: memref<1x64xf32, #tpu.memory_space<vmem>>, %arg4: memref<128x64xf32, #tpu.memory_space<vmem>>, %arg5: memref<1x128xf32, #tpu.memory_space<vmem>>, %arg6: memref<8x128xf32, #tpu.memory_space<vmem>>) attributes {dimension_semantics = [#tpu.dimension_semantics<arbitrary>], iteration_bounds = array<i64: 1>, scalar_prefetch = 0 : i64, scratch_operands = 0 : i64, tpu.core_type = #tpu.core_type<tc>, window_params = [{pipeline_mode = #tpu.pipeline_mode<synchronous>, transform_indices = @transform_0, window_bounds = array<i64: 8, 32>}, {pipeline_mode = #tpu.pipeline_mode<synchronous>, transform_indices = @transform_1, window_bounds = array<i64: 64, 32>}, {pipeline_mode = #tpu.pipeline_mode<synchronous>, transform_indices = @transform_2, window_bounds = array<i64: 1, 64>}, {pipeline_mode = #tpu.pipeline_mode<synchronous>, transform_indices = @transform_3, window_bounds = array<i64: 128, 64>}, {pipeline_mode = #tpu.pipeline_mode<synchronous>, transform_indices = @transform_4, window_bounds = array<i64: 1, 128>}, {pipeline_mode = #tpu.pipeline_mode<synchronous>, transform_indices = @transform_5, window_bounds = array<i64: 8, 128>}]} {
    %c0 = arith.constant 0 : index
    %c0_0 = arith.constant 0 : index
    %0 = vector.load %arg1[%c0, %c0_0] : memref<8x32xf32, #tpu.memory_space<vmem>>, vector<8x32xf32>
    %c0_1 = arith.constant 0 : index
    %c0_2 = arith.constant 0 : index
    %1 = vector.load %arg2[%c0_1, %c0_2] : memref<64x32xf32, #tpu.memory_space<vmem>>, vector<64x32xf32>
    %cst = arith.constant dense<0.000000e+00> : vector<8x64xf32>
    %2 = tpu.matmul %0, %1, %cst {dimension_numbers = #tpu.dot_dimension_numbers<[1], [1], [0], [0], [0, 0, 1, 0], [], []>} : vector<8x32xf32>, vector<64x32xf32>, vector<8x64xf32> -> vector<8x64xf32>
    %c0_3 = arith.constant 0 : index
    %c0_4 = arith.constant 0 : index
    %3 = vector.load %arg3[%c0_3, %c0_4] : memref<1x64xf32, #tpu.memory_space<vmem>>, vector<1x64xf32>
    %4 = vector.broadcast %3 : vector<1x64xf32> to vector<8x64xf32>
    %5 = arith.addf %2, %4 : vector<8x64xf32>
    %6 = math.tanh %5 : vector<8x64xf32>
    %c0_5 = arith.constant 0 : index
    %c0_6 = arith.constant 0 : index
    %7 = vector.load %arg4[%c0_5, %c0_6] : memref<128x64xf32, #tpu.memory_space<vmem>>, vector<128x64xf32>
    %cst_7 = arith.constant dense<0.000000e+00> : vector<8x128xf32>
    %8 = tpu.matmul %6, %7, %cst_7 {dimension_numbers = #tpu.dot_dimension_numbers<[1], [1], [0], [0], [0, 0, 1, 0], [], []>} : vector<8x64xf32>, vector<128x64xf32>, vector<8x128xf32> -> vector<8x128xf32>
    %c0_8 = arith.constant 0 : index
    %c0_9 = arith.constant 0 : index
    %9 = vector.load %arg5[%c0_8, %c0_9] : memref<1x128xf32, #tpu.memory_space<vmem>>, vector<1x128xf32>
    %10 = vector.broadcast %9 : vector<1x128xf32> to vector<8x128xf32>
    %11 = arith.addf %8, %10 : vector<8x128xf32>
    %c0_10 = arith.constant 0 : index
    %c0_11 = arith.constant 0 : index
    %12 = vector.load %arg6[%c0_10, %c0_11] : memref<8x128xf32, #tpu.memory_space<vmem>>, vector<8x128xf32>
    tpu.vector_store %arg6[%c0_10, %c0_11], %11 {strides = array<i32>} : memref<8x128xf32, #tpu.memory_space<vmem>>, vector<8x128xf32>,
    return
  }
  func.func @transform_0(%arg0: i32) -> (i32, i32) {
    %c0_i32 = arith.constant 0 : i32
    %c0_i32_0 = arith.constant 0 : i32
    %c0_i32_1 = arith.constant 0 : i32
    return %c0_i32, %c0_i32_0 : i32, i32
  }
  func.func @transform_1(%arg0: i32) -> (i32, i32) {
    %c0_i32 = arith.constant 0 : i32
    %c0_i32_0 = arith.constant 0 : i32
    %c0_i32_1 = arith.constant 0 : i32
    return %c0_i32, %c0_i32_0 : i32, i32
  }
  func.func @transform_2(%arg0: i32) -> (i32, i32) {
    %c0_i32 = arith.constant 0 : i32
    %c0_i32_0 = arith.constant 0 : i32
    %c0_i32_1 = arith.constant 0 : i32
    return %c0_i32, %c0_i32_0 : i32, i32
  }
  func.func @transform_3(%arg0: i32) -> (i32, i32) {
    %c0_i32 = arith.constant 0 : i32
    %c0_i32_0 = arith.constant 0 : i32
    %c0_i32_1 = arith.constant 0 : i32
    return %c0_i32, %c0_i32_0 : i32, i32
  }
  func.func @transform_4(%arg0: i32) -> (i32, i32) {
    %c0_i32 = arith.constant 0 : i32
    %c0_i32_0 = arith.constant 0 : i32
    %c0_i32_1 = arith.constant 0 : i32
    return %c0_i32, %c0_i32_0 : i32, i32
  }
  func.func @transform_5(%arg0: i32) -> (i32, i32) {
    %c0_i32 = arith.constant 0 : i32
    %c0_i32_0 = arith.constant 0 : i32
    %c0_i32_1 = arith.constant 0 : i32
    return %c0_i32, %c0_i32_0 : i32, i32
  }
}

</mosaic_0001>

<bundles_post_ra>
// kernel: fwd.1
= control target key start
LH: loop header
LB: loop body
LE: loop exit
PB: predicated region body
PF: predicated region fallthrough
CT: control target
= control target key end

     0   :  { %10 = vsyncpa [#allocation3], 0  ;;  %s651_s0 = inlined_call_operand.vmem [shape: f32[8,32], index: 0, kind: input, shape index: {}]   ;;  %s652_s1 = inlined_call_operand.hbm [shape: f32[64,32], index: 1, kind: input, shape index: {}]   ;;  %s653_s2 = inlined_call_operand.vmem [shape: f32[1,64], index: 2, kind: input, shape index: {}]   ;;  %s654_s3 = inlined_call_operand.hbm [shape: f32[128,64], index: 3, kind: input, shape index: {}]   ;;  %s655_s4 = inlined_call_operand.vmem [shape: f32[1,128], index: 4, kind: input, shape index: {}]   ;;  %s656_s5 = inlined_call_operand.vmem [shape: f32[8,128], index: 5, kind: output, shape index: {}]  }
   0x1   :  { %11 = vsyncpa [#allocation5], 0  ;;  %s528_s18 = smov [#allocation2]   ;;  %s480_s22 = scalar_lea.hbm %s652_s1, 1024 }
   0x2   :  { %s19_s19 = sshll.u32 %s528_s18, 4  ;;  %p481_p0 = scmp.ne.s32.totalorder %s652_s1, %s480_s22  ;;  %s20_s19 = int_to_ptr.vmem [resolvable:$true] %s19_s19 }
   0x3   :  { %p484_p1 = scmp.lt.u32.totalorder %s480_s22, %s652_s1 }
   0x5   :  { %p486_p2 = pnand %p484_p1, %p481_p0 }
   0x7   :  { %489 = shalt.err (!%p486_p2)
}
   0x8   :  { %s490_s27 = scalar_lea.vmem %s20_s19, 1024  ;;  %p495_p4 = scmp.lt.s32.totalorder %s20_s19, %s20_s19 }
   0x9   :  { %p491_p3 = scmp.ne.s32.totalorder %s20_s19, %s490_s27  ;;  %p496_p5 = scmp.lt.s32.totalorder %s490_s27, %s490_s27 }
   0xb   :  { %p497_p6 = por %p496_p5, %p495_p4 }
   0xd   :  { %p498_p7 = pnand %p497_p6, %p491_p3 }
   0xf   :  { %501 = shalt.err (!%p498_p7)
}
  0x10   :  { %s529_s28 = smov 128   ;;  %s530_s29 = smov 8  }
  0x11   :  { %25 = dma.hbm_to_vmem [thread:$0]  %s652_s1, 1024, %s20_s19, [#allocation3], %s529_s28, %s529_s28, %s530_s29  }
  0x12   :  { %s531_s7 = smov [#allocation4]   ;;  %s502_s11 = scalar_lea.hbm %s654_s3, 2048 }
  0x13   :  { %s33_s8 = sshll.u32 %s531_s7, 4  ;;  %p503_p8 = scmp.ne.s32.totalorder %s654_s3, %s502_s11  ;;  %s34_s8 = int_to_ptr.vmem [resolvable:$true] %s33_s8 }
  0x14   :  { %p506_p9 = scmp.lt.u32.totalorder %s502_s11, %s654_s3 }
  0x16   :  { %p508_p10 = pnand %p506_p9, %p503_p8 }
  0x18   :  { %511 = shalt.err (!%p508_p10)
}
  0x19   :  { %s512_s16 = scalar_lea.vmem %s34_s8, 2048  ;;  %p517_p12 = scmp.lt.s32.totalorder %s34_s8, %s34_s8 }
  0x1a   :  { %p513_p11 = scmp.ne.s32.totalorder %s34_s8, %s512_s16  ;;  %p518_p13 = scmp.lt.s32.totalorder %s512_s16, %s512_s16 }
  0x1c   :  { %p519_p0 = por %p518_p13, %p517_p12 }
  0x1e   :  { %p520_p1 = pnand %p519_p0, %p513_p11 }
  0x20   :  { %523 = shalt.err (!%p520_p1)
}
  0x21   :  { %39 = dma.hbm_to_vmem [thread:$0]  %s654_s3, 2048, %s34_s8, [#allocation5], %s529_s28, %s529_s28, %s530_s29  }
  0x22   :  { %524 = dma.done.wait [#allocation3], 1024  }
  0x23   :  { %525 = vsyncadd [#allocation3], 4294966272 }
  0x24   :  { %526 = dma.done.wait [#allocation5], 2048  }
  0x25   :  { %527 = vsyncadd [#allocation5], 4294965248  ;;  %v532_v0 = vmov 0.0|0.0   ;;  %vm533_vm0 = vmmov 0   ;;  %v534_v1 = vmov 0.0   ;;  %vm64_vm1 = vcmask 261120  }
  0x26   :  { %423 = vmatprep.subr.bf16.mxu0 %v532_v0  ;;  %385 = vmatprep.mubr.msk.f32.mxu0 %vm533_vm0, %v534_v1  ;;  %v49_v2 = vld [vmem:[#allocation2] sm:$0xff]  ;;  %v50_v3 = vld [vmem:[#allocation2 + $0x8] sm:$0xff]  ;;  %vm593_vm2 = vmpackc.low %vm64_vm1, %vm64_vm1  ;;  %vm186_vm3 = vcmask 523264  }
  0x27   :  { %439 = vmatprep.subr.bf16.mxu1 %v532_v0  ;;  %420 = vmatprep.mubr.msk.f32.mxu1 %vm533_vm0, %v534_v1  ;;  %v424_v5 = vpack.c.bf16 %v50_v3, %v49_v2  ;;  %v163_v6 = vld [vmem:[#allocation4] sm:$0xff]  ;;  %v164_v7 = vld [vmem:[#allocation4 + $0x8] sm:$0xff]  ;;  %vm601_vm4 = vmpackc.low %vm186_vm3, %vm186_vm3 }
  0x28   :  { %v51_v9 = vld [vmem:[#allocation2 + $0x10] sm:$0xff]  ;;  %v52_v10 = vld [vmem:[#allocation2 + $0x18] sm:$0xff]  ;;  %v440_v11 = vpack.c.bf16 %v164_v7, %v163_v6  ;;  %v53_v16 = vld [vmem:[#allocation2 + $0x20] sm:$0xff] }
  0x29   :  { %426 = vmatpush3.bf16.xpose.msk.msra.mxu0 %vm593_vm2, %v424_v5  ;;  %v428_v12 = vpack.c.bf16 %v52_v10, %v51_v9  ;;  %v165_v13 = vld [vmem:[#allocation4 + $0x10] sm:$0xff]  ;;  %v166_v14 = vld [vmem:[#allocation4 + $0x18] sm:$0xff]  ;;  %v54_v17 = vld [vmem:[#allocation2 + $0x28] sm:$0xff] }
  0x2a   :  { %427 = vmatprep.subr.bf16.mxu0 %v532_v0  ;;  %442 = vmatpush3.bf16.xpose.msk.msra.mxu1 %vm601_vm4, %v440_v11  ;;  %v444_v15 = vpack.c.bf16 %v166_v14, %v165_v13  ;;  %v432_v18 = vpack.c.bf16 %v54_v17, %v53_v16  ;;  %v167_v19 = vld [vmem:[#allocation4 + $0x20] sm:$0xff]  ;;  %v168_v20 = vld [vmem:[#allocation4 + $0x28] sm:$0xff]  ;;  %v55_v22 = vld [vmem:[#allocation2 + $0x30] sm:$0xff] }
  0x2b   :  { %443 = vmatprep.subr.bf16.mxu1 %v532_v0  ;;  %v448_v21 = vpack.c.bf16 %v168_v20, %v167_v19  ;;  %v56_v23 = vld [vmem:[#allocation2 + $0x38] sm:$0xff]  ;;  %v169_v25 = vld [vmem:[#allocation4 + $0x30] sm:$0xff]  ;;  %v48_v28 = vld [vmem:[%s651_s0] sm:$0xff] }
  0x2c   :  { %v436_v24 = vpack.c.bf16 %v56_v23, %v55_v22  ;;  %v170_v26 = vld [vmem:[#allocation4 + $0x38] sm:$0xff]  ;;  %v171_v29 = vld [vmem:[#allocation4 + $0x40] sm:$0xff]  ;;  %v172_v30 = vld [vmem:[#allocation4 + $0x48] sm:$0xff] }
  0x2d   :  { %v452_v27 = vpack.c.bf16 %v170_v26, %v169_v25  ;;  %v456_v31 = vpack.c.bf16 %v172_v30, %v171_v29  ;;  %v173_v32 = vld [vmem:[#allocation4 + $0x50] sm:$0xff]  ;;  %v174_v33 = vld [vmem:[#allocation4 + $0x58] sm:$0xff]  ;;  %v175_v35 = vld [vmem:[#allocation4 + $0x60] sm:$0xff] }
  0x2e   :  { %v460_v34 = vpack.c.bf16 %v174_v33, %v173_v32  ;;  %v176_v36 = vld [vmem:[#allocation4 + $0x68] sm:$0xff]  ;;  %v177_v38 = vld [vmem:[#allocation4 + $0x70] sm:$0xff]  ;;  %v178_v39 = vld [vmem:[#allocation4 + $0x78] sm:$0xff] }
  0x2f   :  { %v464_v37 = vpack.c.bf16 %v176_v36, %v175_v35  ;;  %v468_v40 = vpack.c.bf16 %v178_v39, %v177_v38  ;;  %v315_v41 = vld [vmem:[%s653_s2] ss:$0 sm:$0xff] }
  0x30   :  { %v325_v46 = vld [vmem:[%s655_s4] ss:$0 sm:$0xff] }
  0x31   :  { %430 = vmatpush3.bf16.xpose.msk.msra.mxu0 %vm593_vm2, %v428_v12 }
  0x32   :  { %431 = vmatprep.subr.bf16.mxu0 %v532_v0  ;;  %446 = vmatpush3.bf16.xpose.msk.msra.mxu1 %vm601_vm4, %v444_v15 }
  0x33   :  { %447 = vmatprep.subr.bf16.mxu1 %v532_v0 }
  0x39   :  { %434 = vmatpush3.bf16.xpose.msk.msra.mxu0 %vm593_vm2, %v432_v18 }
  0x3a   :  { %435 = vmatprep.subr.bf16.mxu0 %v532_v0  ;;  %450 = vmatpush3.bf16.xpose.msk.msra.mxu1 %vm601_vm4, %v448_v21 }
  0x3b   :  { %451 = vmatprep.subr.bf16.mxu1 %v532_v0 }
  0x41   :  { %438 = vmatpush3.bf16.xpose.msk.msra.mxu0 %vm593_vm2, %v436_v24 }
  0x42   :  { %454 = vmatpush3.bf16.xpose.msk.msra.mxu1 %vm601_vm4, %v452_v27 }
  0x43   :  { %455 = vmatprep.subr.bf16.mxu1 %v532_v0 }
  0x48   :  { %386 = vmatmul.mubr.msk.f32.vlgmr.msra.gmra.mrb[0].mxu0 %vm64_vm1, %v48_v28 }
  0x4a   :  { %458 = vmatpush3.bf16.xpose.msk.msra.mxu1 %vm601_vm4, %v456_v31 }
  0x4b   :  { %459 = vmatprep.subr.bf16.mxu1 %v532_v0 }
  0x52   :  { %462 = vmatpush3.bf16.xpose.msk.msra.mxu1 %vm601_vm4, %v460_v34 }
  0x53   :  { %463 = vmatprep.subr.bf16.mxu1 %v532_v0 }
  0x5a   :  { %466 = vmatpush3.bf16.xpose.msk.msra.mxu1 %vm601_vm4, %v464_v37 }
  0x5b   :  { %467 = vmatprep.subr.bf16.mxu1 %v532_v0 }
  0x62   :  { %470 = vmatpush3.bf16.xpose.msk.msra.mxu1 %vm601_vm4, %v468_v40 }
 0x11b   :  { %v158_v42 = vpop.f32.mrb[0].mxu0 }
 0x11c   :  { %v159_v43 = vadd.f32 %v315_v41, %v158_v42  ;;  %v387_v44 = vpop.f32.mrb[1].mxu0 }
 0x11e   :  { %478 = vtanh.f32 %v159_v43 }
 0x128   :  { %v479_v45 = vpop.eup %478 }
 0x129   :  { %421 = vmatmul.mubr.msk.f32.vlgmr.msra.gmra.mrb[0].mxu1 %vm186_vm3, %v479_v45 }
 0x1fc   :  { %v304_v47 = vpop.f32.mrb[0].mxu1 }
 0x1fd   :  { %v305_v48 = vadd.f32 %v325_v46, %v304_v47  ;;  %v422_v49 = vpop.f32.mrb[1].mxu1 }
 0x1ff   :  { %308 = vst [vmem:[%s656_s5] sm:$0xff] %v305_v48 }
 0x200   :  { %313 = vsyncpa [#allocation3], 1 }
 0x201   :  { %314 = vsyncpa [#allocation5], 1 }

</bundles_post_ra>
